<compile_context>
chip_gen: v6e
topology: v6e:2x2x1
jax: 0.10.0
libtpu: 0.0.40
codegen_flags: <defaults>
</compile_context>

<pallas_src>
import functools

import jax
import jax.numpy as jnp
from jax.experimental import pallas as pl
from jax.experimental.pallas import tpu as pltpu


def trunk_kernel(y_ref, w1_ref, b1_ref, w2_ref, b2_ref, w3_ref, b3_ref, o_ref):
    """Whole MLP hot path (Linear -> ReLU -> Linear -> ReLU -> Linear) in VMEM."""
    x = y_ref[...].astype(jnp.float32)

    h = jnp.dot(x, w1_ref[...], preferred_element_type=jnp.float32) + b1_ref[...]
    h = jnp.maximum(h, 0.0)

    h = jnp.dot(h, w2_ref[...], preferred_element_type=jnp.float32) + b2_ref[...]
    h = jnp.maximum(h, 0.0)

    out = jnp.dot(h, w3_ref[...], preferred_element_type=jnp.float32) + b3_ref[...]
    o_ref[...] = out.astype(o_ref.dtype)


def _block_diag(w, pack):
    """(a, b) -> (pack*a, pack*b) block-diagonal with `w` repeated on the diagonal."""
    return jnp.kron(jnp.eye(pack, dtype=w.dtype), w)


def _tile_bias(b, pack):
    """(1, d) -> (1, pack*d), one copy of the bias per packed row segment."""
    return jnp.tile(b, (1, pack))


@functools.partial(jax.jit, static_argnames=("tile_m", "pack", "out_dtype"))
def trunk_net(y, params, *, tile_m=512, pack=2, out_dtype=None):
    """y: (N, input_dim); params: (w1,b1,w2,b2,w3,b3), biases shaped (1, dim).

    `pack` rows are fused per output row so the stored slab is pack*out_dim lanes
    wide (128 for out_dim=64, pack=2) -> lane-dense, unmasked stores.
    """
    w1, b1, w2, b2, w3, b3 = params
    n, in_dim = y.shape
    out_dim = w3.shape[1]
    out_dtype = y.dtype if out_dtype is None else out_dtype

    assert tile_m % pack == 0, "tile_m must be divisible by pack"
    assert (tile_m // pack) % 8 == 0, "packed tile rows must be a sublane multiple"

    # Pad N up to a tile multiple (padded rows compute garbage and are sliced off).
    n_pad = -(-n // tile_m) * tile_m
    if n_pad != n:
        y = jnp.pad(y, ((0, n_pad - n), (0, 0)))

    # Row-packing: (n_pad, in_dim) -> (n_pad//pack, pack*in_dim) is a free
    # row-major reshape; block-diagonal weights keep the packed segments independent.
    y_packed = y.reshape(n_pad // pack, pack * in_dim)
    w1p, b1p = _block_diag(w1, pack), _tile_bias(b1, pack)
    w2p, b2p = _block_diag(w2, pack), _tile_bias(b2, pack)
    w3p, b3p = _block_diag(w3, pack), _tile_bias(b3, pack)

    tile_rows = tile_m // pack
    grid = (n_pad // tile_m,)

    full = lambda i: (0, 0)  # weights/biases are tiny: one full, grid-invariant block
    in_specs = [
        pl.BlockSpec((tile_rows, pack * in_dim), lambda i: (i, 0)),  # packed y tile
        pl.BlockSpec(w1p.shape, full),
        pl.BlockSpec(b1p.shape, full),
        pl.BlockSpec(w2p.shape, full),
        pl.BlockSpec(b2p.shape, full),
        pl.BlockSpec(w3p.shape, full),
        pl.BlockSpec(b3p.shape, full),
    ]
    out_spec = pl.BlockSpec((tile_rows, pack * out_dim), lambda i: (i, 0))

    out_packed = pl.pallas_call(
        trunk_kernel,
        out_shape=jax.ShapeDtypeStruct((n_pad // pack, pack * out_dim), out_dtype),
        grid_spec=pltpu.PrefetchScalarGridSpec(
            num_scalar_prefetch=0,
            grid=grid,
            in_specs=in_specs,
            out_specs=out_spec,
        ),
        compiler_params=pltpu.CompilerParams(
            dimension_semantics=("parallel",),
            vmem_limit_bytes=32 * 1024 * 1024,  # explicit budget; safe on v5e/v6e/v7x
        ),
    )(y_packed, w1p, b1p, w2p, b2p, w3p, b3p)

    # Un-pack: (n_pad//pack, pack*out_dim) -> (n_pad, out_dim) is a pure row-major
    # view (metadata only), then drop padded rows.
    return out_packed.reshape(n_pad, out_dim)[:n]


def init_params(key, input_dim, hidden_dims, output_dim, dtype=jnp.float32):
    """Deterministic synthetic init matching nn.Linear shapes (stored transposed)."""
    dims = [input_dim] + list(hidden_dims) + [output_dim]
    params = []
    for i in range(len(dims) - 1):
        key, kw, kb = jax.random.split(key, 3)
        fan_in = dims[i]
        bound = 1.0 / jnp.sqrt(fan_in)
        w = jax.random.uniform(kw, (dims[i], dims[i + 1]), dtype, -bound, bound)
        b = jax.random.uniform(kb, (1, dims[i + 1]), dtype, -bound, bound)
        params += [w, b]
    return tuple(params)


def trunk_net_ref(y, params):
    """Plain-JAX reference matching the PyTorch Sequential semantics."""
    w1, b1, w2, b2, w3, b3 = params
    h = jnp.maximum(y @ w1 + b1, 0.0)
    h = jnp.maximum(h @ w2 + b2, 0.0)
    return h @ w3 + b3


if __name__ == "__main__":
    # Small shapes consistent with the module: points y in R^2, two hidden layers.
    # n_points deliberately not a multiple of tile_m to exercise the padding path;
    # after padding to 1024 the grid has 2 steps (keeps both v7x TCs busy).
    input_dim, hidden_dims, output_dim = 2, (32, 32), 64
    n_points = 1000

    key = jax.random.PRNGKey(0)
    k_y, k_p = jax.random.split(key)
    y = jax.random.normal(k_y, (n_points, input_dim), dtype=jnp.float32)
    params = init_params(k_p, input_dim, hidden_dims, output_dim)

    out = trunk_net(y, params)
    out = jax.block_until_ready(out)

    ref = trunk_net_ref(y, params)
    assert out.shape == (n_points, output_dim)
    assert jnp.allclose(out, ref, atol=1e-5, rtol=1e-5), "mismatch vs reference"

    print("KERNEL_OK")
</pallas_src>

<mosaic_0001>
module attributes {stable_mosaic.version = 11 : i64} {
  func.func @trunk_kernel(%arg0: i32, %arg1: memref<256x4xf32, #tpu.memory_space<vmem>>, %arg2: memref<4x64xf32, #tpu.memory_space<vmem>>, %arg3: memref<1x64xf32, #tpu.memory_space<vmem>>, %arg4: memref<64x64xf32, #tpu.memory_space<vmem>>, %arg5: memref<1x64xf32, #tpu.memory_space<vmem>>, %arg6: memref<64x128xf32, #tpu.memory_space<vmem>>, %arg7: memref<1x128xf32, #tpu.memory_space<vmem>>, %arg8: memref<256x128xf32, #tpu.memory_space<vmem>>) attributes {dimension_semantics = [#tpu.dimension_semantics<parallel>], iteration_bounds = array<i64: 2>, scalar_prefetch = 0 : i64, scratch_operands = 0 : i64, tpu.core_type = #tpu.core_type<tc>, window_params = [{transform_indices = @transform_0, window_bounds = array<i64: 256, 4>}, {pipeline_mode = #tpu.pipeline_mode<synchronous>, transform_indices = @transform_1, window_bounds = array<i64: 4, 64>}, {pipeline_mode = #tpu.pipeline_mode<synchronous>, transform_indices = @transform_2, window_bounds = array<i64: 1, 64>}, {pipeline_mode = #tpu.pipeline_mode<synchronous>, transform_indices = @transform_3, window_bounds = array<i64: 64, 64>}, {pipeline_mode = #tpu.pipeline_mode<synchronous>, transform_indices = @transform_4, window_bounds = array<i64: 1, 64>}, {pipeline_mode = #tpu.pipeline_mode<synchronous>, transform_indices = @transform_5, window_bounds = array<i64: 64, 128>}, {pipeline_mode = #tpu.pipeline_mode<synchronous>, transform_indices = @transform_6, window_bounds = array<i64: 1, 128>}, {transform_indices = @transform_7, window_bounds = array<i64: 256, 128>}]} {
    %c0 = arith.constant 0 : index
    %c0_0 = arith.constant 0 : index
    %0 = vector.load %arg1[%c0, %c0_0] : memref<256x4xf32, #tpu.memory_space<vmem>>, vector<256x4xf32>
    %c0_1 = arith.constant 0 : index
    %c0_2 = arith.constant 0 : index
    %1 = vector.load %arg2[%c0_1, %c0_2] : memref<4x64xf32, #tpu.memory_space<vmem>>, vector<4x64xf32>
    %cst = arith.constant dense<0.000000e+00> : vector<256x64xf32>
    %2 = tpu.matmul %0, %1, %cst {dimension_numbers = #tpu.dot_dimension_numbers<[1], [0], [0], [1], [0, 0, 1, 1], [], []>} : vector<256x4xf32>, vector<4x64xf32>, vector<256x64xf32> -> vector<256x64xf32>
    %c0_3 = arith.constant 0 : index
    %c0_4 = arith.constant 0 : index
    %3 = vector.load %arg3[%c0_3, %c0_4] : memref<1x64xf32, #tpu.memory_space<vmem>>, vector<1x64xf32>
    %4 = vector.broadcast %3 : vector<1x64xf32> to vector<256x64xf32>
    %5 = arith.addf %2, %4 : vector<256x64xf32>
    %cst_5 = arith.constant 0.000000e+00 : f32
    %6 = vector.broadcast %cst_5 : f32 to vector<256x64xf32>
    %7 = arith.maximumf %5, %6 : vector<256x64xf32>
    %c0_6 = arith.constant 0 : index
    %c0_7 = arith.constant 0 : index
    %8 = vector.load %arg4[%c0_6, %c0_7] : memref<64x64xf32, #tpu.memory_space<vmem>>, vector<64x64xf32>
    %cst_8 = arith.constant dense<0.000000e+00> : vector<256x64xf32>
    %9 = tpu.matmul %7, %8, %cst_8 {dimension_numbers = #tpu.dot_dimension_numbers<[1], [0], [0], [1], [0, 0, 1, 1], [], []>} : vector<256x64xf32>, vector<64x64xf32>, vector<256x64xf32> -> vector<256x64xf32>
    %c0_9 = arith.constant 0 : index
    %c0_10 = arith.constant 0 : index
    %10 = vector.load %arg5[%c0_9, %c0_10] : memref<1x64xf32, #tpu.memory_space<vmem>>, vector<1x64xf32>
    %11 = vector.broadcast %10 : vector<1x64xf32> to vector<256x64xf32>
    %12 = arith.addf %9, %11 : vector<256x64xf32>
    %cst_11 = arith.constant 0.000000e+00 : f32
    %13 = vector.broadcast %cst_11 : f32 to vector<256x64xf32>
    %14 = arith.maximumf %12, %13 : vector<256x64xf32>
    %c0_12 = arith.constant 0 : index
    %c0_13 = arith.constant 0 : index
    %15 = vector.load %arg6[%c0_12, %c0_13] : memref<64x128xf32, #tpu.memory_space<vmem>>, vector<64x128xf32>
    %cst_14 = arith.constant dense<0.000000e+00> : vector<256x128xf32>
    %16 = tpu.matmul %14, %15, %cst_14 {dimension_numbers = #tpu.dot_dimension_numbers<[1], [0], [0], [1], [0, 0, 1, 1], [], []>} : vector<256x64xf32>, vector<64x128xf32>, vector<256x128xf32> -> vector<256x128xf32>
    %c0_15 = arith.constant 0 : index
    %c0_16 = arith.constant 0 : index
    %17 = vector.load %arg7[%c0_15, %c0_16] : memref<1x128xf32, #tpu.memory_space<vmem>>, vector<1x128xf32>
    %18 = vector.broadcast %17 : vector<1x128xf32> to vector<256x128xf32>
    %19 = arith.addf %16, %18 : vector<256x128xf32>
    %c0_17 = arith.constant 0 : index
    %c0_18 = arith.constant 0 : index
    %20 = vector.load %arg8[%c0_17, %c0_18] : memref<256x128xf32, #tpu.memory_space<vmem>>, vector<256x128xf32>
    tpu.vector_store %arg8[%c0_17, %c0_18], %19 {strides = array<i32>} : memref<256x128xf32, #tpu.memory_space<vmem>>, vector<256x128xf32>,
    return
  }
  func.func @transform_0(%arg0: i32) -> (i32, i32) {
    %c0_i32 = arith.constant 0 : i32
    %c0_i32_0 = arith.constant 0 : i32
    return %arg0, %c0_i32 : i32, i32
  }
  func.func @transform_1(%arg0: i32) -> (i32, i32) {
    %c0_i32 = arith.constant 0 : i32
    %c0_i32_0 = arith.constant 0 : i32
    %c0_i32_1 = arith.constant 0 : i32
    return %c0_i32, %c0_i32_0 : i32, i32
  }
  func.func @transform_2(%arg0: i32) -> (i32, i32) {
    %c0_i32 = arith.constant 0 : i32
    %c0_i32_0 = arith.constant 0 : i32
    %c0_i32_1 = arith.constant 0 : i32
    return %c0_i32, %c0_i32_0 : i32, i32
  }
  func.func @transform_3(%arg0: i32) -> (i32, i32) {
    %c0_i32 = arith.constant 0 : i32
    %c0_i32_0 = arith.constant 0 : i32
    %c0_i32_1 = arith.constant 0 : i32
    return %c0_i32, %c0_i32_0 : i32, i32
  }
  func.func @transform_4(%arg0: i32) -> (i32, i32) {
    %c0_i32 = arith.constant 0 : i32
    %c0_i32_0 = arith.constant 0 : i32
    %c0_i32_1 = arith.constant 0 : i32
    return %c0_i32, %c0_i32_0 : i32, i32
  }
  func.func @transform_5(%arg0: i32) -> (i32, i32) {
    %c0_i32 = arith.constant 0 : i32
    %c0_i32_0 = arith.constant 0 : i32
    %c0_i32_1 = arith.constant 0 : i32
    return %c0_i32, %c0_i32_0 : i32, i32
  }
  func.func @transform_6(%arg0: i32) -> (i32, i32) {
    %c0_i32 = arith.constant 0 : i32
    %c0_i32_0 = arith.constant 0 : i32
    %c0_i32_1 = arith.constant 0 : i32
    return %c0_i32, %c0_i32_0 : i32, i32
  }
  func.func @transform_7(%arg0: i32) -> (i32, i32) {
    %c0_i32 = arith.constant 0 : i32
    %c0_i32_0 = arith.constant 0 : i32
    return %arg0, %c0_i32 : i32, i32
  }
}

</mosaic_0001>

<bundles_post_ra>
// kernel: trunk_net.1
= control target key start
LH: loop header
LB: loop body
LE: loop exit
PB: predicated region body
PF: predicated region fallthrough
CT: control target
= control target key end

     0   :  { %s1933_s24 = smov 0   ;;  %s2292_s0 = inlined_call_operand.vmem [shape: f32[512,4], index: 0, kind: input, shape index: {}]   ;;  %s2293_s1 = inlined_call_operand.vmem [shape: f32[4,64], index: 1, kind: input, shape index: {}]   ;;  %s2294_s2 = inlined_call_operand.vmem [shape: f32[1,64], index: 2, kind: input, shape index: {}]   ;;  %s2295_s3 = inlined_call_operand.vmem [shape: f32[64,64], index: 3, kind: input, shape index: {}]   ;;  %s2296_s4 = inlined_call_operand.vmem [shape: f32[1,64], index: 4, kind: input, shape index: {}]   ;;  %s2297_s5 = inlined_call_operand.vmem [shape: f32[64,128], index: 5, kind: input, shape index: {}]   ;;  %s2298_s6 = inlined_call_operand.vmem [shape: f32[1,128], index: 6, kind: input, shape index: {}]   ;;  %s2299_s7 = inlined_call_operand.vmem [shape: f32[512,128], index: 7, kind: output, shape index: {}]  }
   0x1 LB: > { %s1473_s25 = sadd.s32 4294967295, %s1891_s24   ;;  %p1477_p0 = scmp.ge.s32.totalorder %s1891_s24, 1  ;;  %s1891_s24 = sphi %s1933_s24, %s17_s24  }
   0x2   : > { %p238_p1 = scmp.lt.s32.totalorder %s1891_s24, 3 }
   0x4   : > { %p239_p2 = pnand %p1477_p0, %p238_p1 }
   0x5   : > { %s1478_s28 = sshll.u32 (!%p239_p2), %s1473_s25, 5 }
   0x6   : > { %242 = sbr.rel (%p239_p2) target bundleno = 674 (0x2a2), region = 48  ;;  %p271_p3 = scmp.lt.s32.totalorder (!%p239_p2), %s1478_s28, 63 }
   0xb   : > { %v314_v0 = vld [vmem:[%s2293_s1] sm:$0xf]  ;;  %vm419_vm0 = vcmask 1043456   ;;  %v687_v1 = vld [vmem:[%s2295_s3 + $0x38] sm:$0xff]  ;;  %s2301_s28 = smov (!%p271_p3, %s1478_s28), 63  ;;  %vm322_vm1 = vcmask 31744  }
   0xc   : > { %1697 = vmatprep.subr.msk.mxu0 %vm419_vm0, %v314_v0  ;;  %1875 = vmatprep.subr.msk.mxu1 %vm419_vm0, %v314_v0  ;;  %s1479_s8 = sshll.u32 %s2301_s28, 3  ;;  %v686_v10 = vld [vmem:[%s2295_s3 + $0x30] sm:$0xff]  ;;  %v685_v15 = vld [vmem:[%s2295_s3 + $0x28] sm:$0xff]  ;;  %v684_v17 = vld [vmem:[%s2295_s3 + $0x20] sm:$0xff]  ;;  %vm695_vm2 = vcmask 523264  }
   0xd   : > { %1698 = vmatpush3.msk.msra.mxu0 %vm419_vm0, %v314_v0  ;;  %1876 = vmatpush3.msk.msra.mxu1 %vm419_vm0, %v314_v0  ;;  %s1955_s11 = scalar_lea.vmem %s2292_s0, %s1479_s8  ;;  %v683_v21 = vld [vmem:[%s2295_s3 + $0x18] sm:$0xff]  ;;  %v682_v26 = vld [vmem:[%s2295_s3 + $0x10] sm:$0xff]  ;;  %v681_v28 = vld [vmem:[%s2295_s3 + $0x8] sm:$0xff]  ;;  %s2223_s10 = scalar_lea.vmem %s2299_s7, %s1479_s8 }
   0xe   : > { %1747 = vmatprep.subr.mxu1 %v687_v1  ;;  %v282_v2 = vld [vmem:[%s1955_s11] sm:$0xff]  ;;  %v283_v3 = vld [vmem:[%s1955_s11 + $0x8] sm:$0xff]  ;;  %v284_v4 = vld [vmem:[%s1955_s11 + $0x10] sm:$0xff] }
   0xf   : > { %1699 = vmatprep.mubr.msk.f32.mxu0 %vm322_vm1, %v282_v2  ;;  %v285_v5 = vld [vmem:[%s1955_s11 + $0x18] sm:$0xff]  ;;  %v286_v6 = vld [vmem:[%s1955_s11 + $0x20] sm:$0xff]  ;;  %v299_v8 = vld [vmem:[%s1955_s11 + $0x88] sm:$0xff] }
  0x10   : > { %1700 = vmatmul.mubr.msk.f32.vlgmr.msra.gmra.mxu0 %vm322_vm1, %v283_v3  ;;  %v298_v7 = vld [vmem:[%s1955_s11 + $0x80] sm:$0xff]  ;;  %v300_v9 = vld [vmem:[%s1955_s11 + $0x90] sm:$0xff]  ;;  %v287_v11 = vld [vmem:[%s1955_s11 + $0x28] sm:$0xff] }
  0x11   : > { %1702 = vmatprep.mubr.msk.f32.mxu0 %vm322_vm1, %v284_v4  ;;  %1723 = vmatprep.mubr.msk.f32.mxu1 %vm322_vm1, %v298_v7  ;;  %v288_v12 = vld [vmem:[%s1955_s11 + $0x30] sm:$0xff]  ;;  %v301_v13 = vld [vmem:[%s1955_s11 + $0x98] sm:$0xff]  ;;  %v302_v14 = vld [vmem:[%s1955_s11 + $0xa0] sm:$0xff] }
  0x12   : > { %1724 = vmatmul.mubr.msk.f32.vlgmr.msra.gmra.mxu1 %vm322_vm1, %v299_v8  ;;  %v289_v16 = vld [vmem:[%s1955_s11 + $0x38] sm:$0xff]  ;;  %v290_v18 = vld [vmem:[%s1955_s11 + $0x40] sm:$0xff]  ;;  %v303_v19 = vld [vmem:[%s1955_s11 + $0xa8] sm:$0xff] }
  0x13   : > { %1726 = vmatprep.mubr.msk.f32.mxu1 %vm322_vm1, %v300_v9  ;;  %1748 = vmatpush3.msra.mxu1 %v687_v1  ;;  %v304_v20 = vld [vmem:[%s1955_s11 + $0xb0] sm:$0xff]  ;;  %v291_v22 = vld [vmem:[%s1955_s11 + $0x48] sm:$0xff]  ;;  %v305_v24 = vld [vmem:[%s1955_s11 + $0xb8] sm:$0xff] }
  0x14   : > { %1703 = vmatmul.mubr.msk.f32.gmra.mxu0 %vm322_vm1, %v285_v5  ;;  %1749 = vmatprep.subr.mxu1 %v686_v10  ;;  %v292_v23 = vld [vmem:[%s1955_s11 + $0x50] sm:$0xff]  ;;  %v306_v25 = vld [vmem:[%s1955_s11 + $0xc0] sm:$0xff]  ;;  %v293_v27 = vld [vmem:[%s1955_s11 + $0x58] sm:$0xff] }
  0x15   : > { %1705 = vmatprep.mubr.msk.f32.mxu0 %vm322_vm1, %v286_v6  ;;  %1750 = vmatpush3.msra.mxu1 %v686_v10  ;;  %v294_v29 = vld [vmem:[%s1955_s11 + $0x60] sm:$0xff]  ;;  %v307_v30 = vld [vmem:[%s1955_s11 + $0xc8] sm:$0xff]  ;;  %v308_v31 = vld [vmem:[%s1955_s11 + $0xd0] sm:$0xff] }
  0x16   : > { %1727 = vmatmul.mubr.msk.f32.gmra.mxu1 %vm322_vm1, %v301_v13  ;;  %1751 = vmatprep.subr.mxu1 %v685_v15  ;;  %v295_v32 = vld [vmem:[%s1955_s11 + $0x68] sm:$0xff]  ;;  %v296_v33 = vld [vmem:[%s1955_s11 + $0x70] sm:$0xff]  ;;  %v309_v34 = vld [vmem:[%s1955_s11 + $0xd8] sm:$0xff] }
  0x17   : > { %1729 = vmatprep.mubr.msk.f32.mxu1 %vm322_vm1, %v302_v14  ;;  %1752 = vmatpush3.msra.mxu1 %v685_v15  ;;  %v310_v35 = vld [vmem:[%s1955_s11 + $0xe0] sm:$0xff]  ;;  %v297_v36 = vld [vmem:[%s1955_s11 + $0x78] sm:$0xff]  ;;  %v311_v37 = vld [vmem:[%s1955_s11 + $0xe8] sm:$0xff] }
  0x18   : > { %1706 = vmatmul.mubr.msk.f32.gmra.mxu0 %vm322_vm1, %v287_v11  ;;  %1753 = vmatprep.subr.mxu1 %v684_v17  ;;  %v312_v38 = vld [vmem:[%s1955_s11 + $0xf0] sm:$0xff]  ;;  %v313_v39 = vld [vmem:[%s1955_s11 + $0xf8] sm:$0xff]  ;;  %v680_v40 = vld [vmem:[%s2295_s3] sm:$0xff] }
  0x19   : > { %1708 = vmatprep.mubr.msk.f32.mxu0 %vm322_vm1, %v288_v12  ;;  %1754 = vmatpush3.msra.mxu1 %v684_v17  ;;  %v1056_v41 = vld [vmem:[%s2297_s5 + $0x38] sm:$0xff]  ;;  %v1055_v42 = vld [vmem:[%s2297_s5 + $0x30] sm:$0xff]  ;;  %v1054_v43 = vld [vmem:[%s2297_s5 + $0x28] sm:$0xff] }
  0x1a   : > { %1730 = vmatmul.mubr.msk.f32.gmra.mxu1 %vm322_vm1, %v303_v19  ;;  %1755 = vmatprep.subr.mxu1 %v683_v21  ;;  %v1053_v44 = vld [vmem:[%s2297_s5 + $0x20] sm:$0xff]  ;;  %v1052_v45 = vld [vmem:[%s2297_s5 + $0x18] sm:$0xff]  ;;  %v1051_v46 = vld [vmem:[%s2297_s5 + $0x10] sm:$0xff] }
  0x1b   : > { %1732 = vmatprep.mubr.msk.f32.mxu1 %vm322_vm1, %v304_v20  ;;  %1756 = vmatpush3.msra.mxu1 %v683_v21  ;;  %v1050_v47 = vld [vmem:[%s2297_s5 + $0x8] sm:$0xff]  ;;  %v2066_v48 = vld [vmem:[%s2294_s2] ss:$0 sm:$0xff] }
  0x1c   : > { %1709 = vmatmul.mubr.msk.f32.gmra.mxu0 %vm322_vm1, %v289_v16  ;;  %1757 = vmatprep.subr.mxu1 %v682_v26 }
  0x1d   : > { %1711 = vmatprep.mubr.msk.f32.mxu0 %vm322_vm1, %v290_v18  ;;  %1758 = vmatpush3.msra.mxu1 %v682_v26 }
  0x1e   : > { %1733 = vmatmul.mubr.msk.f32.gmra.mxu1 %vm322_vm1, %v305_v24  ;;  %1759 = vmatprep.subr.mxu1 %v681_v28 }
  0x1f   : > { %1735 = vmatprep.mubr.msk.f32.mxu1 %vm322_vm1, %v306_v25  ;;  %1760 = vmatpush3.msra.mxu1 %v681_v28 }
  0x20   : > { %1712 = vmatmul.mubr.msk.f32.gmra.mxu0 %vm322_vm1, %v291_v22  ;;  %1761 = vmatprep.subr.mxu1 %v680_v40 }
  0x21   : > { %1714 = vmatprep.mubr.msk.f32.mxu0 %vm322_vm1, %v292_v23  ;;  %1762 = vmatpush3.msra.mxu1 %v680_v40 }
  0x22   : > { %1736 = vmatmul.mubr.msk.f32.gmra.mxu1 %vm322_vm1, %v307_v30  ;;  %1811 = vmatprep.subr.mxu0 %v1056_v41 }
  0x23   : > { %1738 = vmatprep.mubr.msk.f32.mxu1 %vm322_vm1, %v308_v31  ;;  %1812 = vmatpush3.msra.mxu0 %v1056_v41 }
  0x24   : > { %1715 = vmatmul.mubr.msk.f32.gmra.mxu0 %vm322_vm1, %v293_v27  ;;  %1813 = vmatprep.subr.mxu0 %v1055_v42 }
  0x25   : > { %1717 = vmatprep.mubr.msk.f32.mxu0 %vm322_vm1, %v294_v29  ;;  %1814 = vmatpush3.msra.mxu0 %v1055_v42 }
  0x26   : > { %1739 = vmatmul.mubr.msk.f32.gmra.mxu1 %vm322_vm1, %v309_v34  ;;  %1815 = vmatprep.subr.mxu0 %v1054_v43 }
  0x27   : > { %1741 = vmatprep.mubr.msk.f32.mxu1 %vm322_vm1, %v310_v35  ;;  %1816 = vmatpush3.msra.mxu0 %v1054_v43 }
  0x28   : > { %1718 = vmatmul.mubr.msk.f32.gmra.mxu0 %vm322_vm1, %v295_v32  ;;  %1817 = vmatprep.subr.mxu0 %v1053_v44 }
  0x29   : > { %1720 = vmatprep.mubr.msk.f32.mxu0 %vm322_vm1, %v296_v33  ;;  %1818 = vmatpush3.msra.mxu0 %v1053_v44 }
  0x2a   : > { %1742 = vmatmul.mubr.msk.f32.gmra.mxu1 %vm322_vm1, %v311_v37  ;;  %1819 = vmatprep.subr.mxu0 %v1052_v45 }
  0x2b   : > { %1744 = vmatprep.mubr.msk.f32.mxu1 %vm322_vm1, %v312_v38  ;;  %1820 = vmatpush3.msra.mxu0 %v1052_v45 }
  0x2c   : > { %1721 = vmatmul.mubr.msk.f32.gmra.mxu0 %vm322_vm1, %v297_v36  ;;  %1821 = vmatprep.subr.mxu0 %v1051_v46 }
  0x2d   : > { %1822 = vmatpush3.msra.mxu0 %v1051_v46 }
  0x2e   : > { %1745 = vmatmul.mubr.msk.f32.gmra.mxu1 %vm322_vm1, %v313_v39  ;;  %1823 = vmatprep.subr.mxu0 %v1050_v47 }
  0x2f   : > { %1824 = vmatpush3.msra.mxu0 %v1050_v47 }
  0xd0   : > { %v1701_v49 = vpop.f32.mrf.mxu0 }
  0xd1   : > { %v495_v50 = vadd.f32 %v1701_v49, %v2066_v48 }
  0xd2   : > { %v489_v51 = vpop.f32.mrf.mxu0  ;;  %v2070_v55 = vpop.f32.mrf.mxu1 }
  0xd3   : > { %v490_v52 = vadd.f32 %v2066_v48, %v489_v51  ;;  %v649_v56 = vmax.f32 %v495_v50, 0.0  ;;  %v575_v46 = vadd.f32 %v2070_v55, %v2066_v48 }
  0xd4   : > { %v1704_v53 = vpop.f32.mrf.mxu0  ;;  %v569_v60 = vpop.f32.mrf.mxu1 }
  0xd5   : > { %v648_v54 = vmax.f32 %v490_v52, 0.0  ;;  %v505_v57 = vadd.f32 %v1704_v53, %v2066_v48  ;;  %v570_v36 = vadd.f32 %v2066_v48, %v569_v60  ;;  %v665_v51 = vmax.f32 %v575_v46, 0.0 }
  0xd6   : > { %v499_v58 = vpop.f32.mrf.mxu0  ;;  %v2076_v63 = vpop.f32.mrf.mxu1 }
  0xd7   : > { %v500_v59 = vadd.f32 %v2066_v48, %v499_v58  ;;  %1763 = vmatprep.mubr.msk.f32.mxu1 %vm695_vm2, %v648_v54  ;;  %v651_v0 = vmax.f32 %v505_v57, 0.0  ;;  %v664_v43 = vmax.f32 %v570_v36, 0.0  ;;  %v585_v52 = vadd.f32 %v2076_v63, %v2066_v48 }
  0xd8   : > { %v1707_v61 = vpop.f32.mrf.mxu0  ;;  %1764 = vmatmul.mubr.msk.f32.vlgmr.msra.gmra.mxu1 %vm695_vm2, %v649_v56  ;;  %v579_v4 = vpop.f32.mrf.mxu1 }
  0xd9   : > { %v650_v62 = vmax.f32 %v500_v59, 0.0  ;;  %v515_v1 = vadd.f32 %v1707_v61, %v2066_v48  ;;  %v580_v44 = vadd.f32 %v2066_v48, %v579_v4  ;;  %v667_v56 = vmax.f32 %v585_v52, 0.0 }
  0xda   : > { %v509_v2 = vpop.f32.mrf.mxu0  ;;  %v2082_v7 = vpop.f32.mrf.mxu1 }
  0xdb   : > { %v510_v3 = vadd.f32 %v2066_v48, %v509_v2  ;;  %1766 = vmatprep.mubr.msk.f32.mxu1 %vm695_vm2, %v650_v62  ;;  %v653_v8 = vmax.f32 %v515_v1, 0.0  ;;  %v666_v49 = vmax.f32 %v580_v44, 0.0  ;;  %v595_v57 = vadd.f32 %v2082_v7, %v2066_v48 }
  0xdc   : > { %v1710_v5 = vpop.f32.mrf.mxu0  ;;  %1767 = vmatmul.mubr.msk.f32.gmra.mxu1 %vm695_vm2, %v651_v0  ;;  %v589_v12 = vpop.f32.mrf.mxu1 }
  0xdd   : > { %v652_v6 = vmax.f32 %v510_v3, 0.0  ;;  %v525_v9 = vadd.f32 %v1710_v5, %v2066_v48  ;;  %v590_v50 = vadd.f32 %v2066_v48, %v589_v12  ;;  %v669_v61 = vmax.f32 %v595_v57, 0.0 }
  0xde   : > { %v519_v10 = vpop.f32.mrf.mxu0  ;;  %v1734_v18 = vpop.f32.mrf.mxu1 }
  0xdf   : > { %v520_v11 = vadd.f32 %v2066_v48, %v519_v10  ;;  %1769 = vmatprep.mubr.msk.f32.mxu1 %vm695_vm2, %v652_v6  ;;  %v655_v15 = vmax.f32 %v525_v9, 0.0  ;;  %v668_v54 = vmax.f32 %v590_v50, 0.0  ;;  %v605_v62 = vadd.f32 %v1734_v18, %v2066_v48  ;;  %v1049_v18 = vld [vmem:[%s2297_s5] sm:$0xff] }
  0xe0   : > { %v1713_v13 = vpop.f32.mrf.mxu0  ;;  %1770 = vmatmul.mubr.msk.f32.gmra.mxu1 %vm695_vm2, %v653_v8  ;;  %v599_v25 = vpop.f32.mrf.mxu1  ;;  %1825 = vmatprep.subr.mxu0 %v1049_v18 }
  0xe1   : > { %v654_v14 = vmax.f32 %v520_v11, 0.0  ;;  %v535_v16 = vadd.f32 %v1713_v13, %v2066_v48  ;;  %v600_v55 = vadd.f32 %v2066_v48, %v599_v25  ;;  %v671_v2 = vmax.f32 %v605_v62, 0.0  ;;  %1826 = vmatpush3.msra.mxu0 %v1049_v18 }
  0xe2   : > { %v529_v17 = vpop.f32.mrf.mxu0  ;;  %v1737_v32 = vpop.f32.mrf.mxu1 }
  0xe3   : > { %v530_v19 = vadd.f32 %v2066_v48, %v529_v17  ;;  %1772 = vmatprep.mubr.msk.f32.mxu1 %vm695_vm2, %v654_v14  ;;  %v657_v22 = vmax.f32 %v535_v16, 0.0  ;;  %v670_v59 = vmax.f32 %v600_v55, 0.0  ;;  %v615_v3 = vadd.f32 %v1737_v32, %v2066_v48 }
  0xe4   : > { %v1716_v20 = vpop.f32.mrf.mxu0  ;;  %1773 = vmatmul.mubr.msk.f32.gmra.mxu1 %vm695_vm2, %v655_v15  ;;  %v609_v40 = vpop.f32.mrf.mxu1 }
  0xe5   : > { %v656_v21 = vmax.f32 %v530_v19, 0.0  ;;  %v545_v23 = vadd.f32 %v1716_v20, %v2066_v48  ;;  %v610_v60 = vadd.f32 %v2066_v48, %v609_v40  ;;  %v673_v7 = vmax.f32 %v615_v3, 0.0  ;;  %v2147_v19 = vld [vmem:[%s2296_s4] ss:$0 sm:$0xff] }
  0xe6   : > { %v539_v24 = vpop.f32.mrf.mxu0  ;;  %v1740_v47 = vpop.f32.mrf.mxu1 }
  0xe7   : > { %v540_v26 = vadd.f32 %v2066_v48, %v539_v24  ;;  %1775 = vmatprep.mubr.msk.f32.mxu1 %vm695_vm2, %v656_v21  ;;  %v659_v29 = vmax.f32 %v545_v23, 0.0  ;;  %v672_v0 = vmax.f32 %v610_v60, 0.0  ;;  %v625_v8 = vadd.f32 %v1740_v47, %v2066_v48 }
  0xe8   : > { %v1719_v27 = vpop.f32.mrf.mxu0  ;;  %1776 = vmatmul.mubr.msk.f32.gmra.mxu1 %vm695_vm2, %v657_v22  ;;  %v619_v53 = vpop.f32.mrf.mxu1 }
  0xe9   : > { %v658_v28 = vmax.f32 %v540_v26, 0.0  ;;  %v555_v30 = vadd.f32 %v1719_v27, %v2066_v48  ;;  %v620_v1 = vadd.f32 %v2066_v48, %v619_v53  ;;  %v675_v12 = vmax.f32 %v625_v8, 0.0 }
  0xea   : > { %v549_v31 = vpop.f32.mrf.mxu0  ;;  %v1743_v58 = vpop.f32.mrf.mxu1 }
  0xeb   : > { %v550_v33 = vadd.f32 %v2066_v48, %v549_v31  ;;  %1778 = vmatprep.mubr.msk.f32.mxu1 %vm695_vm2, %v658_v28  ;;  %v661_v37 = vmax.f32 %v555_v30, 0.0  ;;  %v674_v5 = vmax.f32 %v620_v1, 0.0  ;;  %v635_v13 = vadd.f32 %v1743_v58, %v2066_v48 }
  0xec   : > { %v1722_v34 = vpop.f32.mrf.mxu0  ;;  %1779 = vmatmul.mubr.msk.f32.gmra.mxu1 %vm695_vm2, %v659_v29  ;;  %v629_v63 = vpop.f32.mrf.mxu1 }
  0xed   : > { %v660_v35 = vmax.f32 %v550_v33, 0.0  ;;  %v565_v38 = vadd.f32 %v1722_v34, %v2066_v48  ;;  %v630_v6 = vadd.f32 %v2066_v48, %v629_v63  ;;  %v677_v15 = vmax.f32 %v635_v13, 0.0 }
  0xee   : > { %v559_v39 = vpop.f32.mrf.mxu0  ;;  %v1746_v4 = vpop.f32.mrf.mxu1 }
  0xef   : > { %v560_v41 = vadd.f32 %v2066_v48, %v559_v39  ;;  %1781 = vmatprep.mubr.msk.f32.mxu1 %vm695_vm2, %v660_v35  ;;  %v663_v45 = vmax.f32 %v565_v38, 0.0  ;;  %v676_v10 = vmax.f32 %v630_v6, 0.0  ;;  %v645_v16 = vadd.f32 %v1746_v4, %v2066_v48 }
  0xf0   : > { %1782 = vmatmul.mubr.msk.f32.gmra.mxu1 %vm695_vm2, %v661_v37  ;;  %v639_v9 = vpop.f32.mrf.mxu1 }
  0xf1   : > { %v662_v42 = vmax.f32 %v560_v41, 0.0  ;;  %v640_v11 = vadd.f32 %v2066_v48, %v639_v9  ;;  %v679_v17 = vmax.f32 %v645_v16, 0.0 }
  0xf3   : > { %1784 = vmatprep.mubr.msk.f32.mxu1 %vm695_vm2, %v662_v42  ;;  %v678_v14 = vmax.f32 %v640_v11, 0.0 }
  0xf4   : > { %1785 = vmatmul.mubr.msk.f32.gmra.mxu1 %vm695_vm2, %v663_v45 }
  0xf5   : > { %1787 = vmatprep.mubr.msk.f32.mxu1 %vm695_vm2, %v664_v43 }
  0xf8   : > { %1788 = vmatmul.mubr.msk.f32.gmra.mxu1 %vm695_vm2, %v665_v51 }
  0xf9   : > { %1790 = vmatprep.mubr.msk.f32.mxu1 %vm695_vm2, %v666_v49 }
  0xfc   : > { %1791 = vmatmul.mubr.msk.f32.gmra.mxu1 %vm695_vm2, %v667_v56 }
  0xfd   : > { %1793 = vmatprep.mubr.msk.f32.mxu1 %vm695_vm2, %v668_v54 }
 0x100   : > { %1794 = vmatmul.mubr.msk.f32.gmra.mxu1 %vm695_vm2, %v669_v61 }
 0x101   : > { %1796 = vmatprep.mubr.msk.f32.mxu1 %vm695_vm2, %v670_v59 }
 0x104   : > { %1797 = vmatmul.mubr.msk.f32.gmra.mxu1 %vm695_vm2, %v671_v2 }
 0x105   : > { %1799 = vmatprep.mubr.msk.f32.mxu1 %vm695_vm2, %v672_v0 }
 0x108   : > { %1800 = vmatmul.mubr.msk.f32.gmra.mxu1 %vm695_vm2, %v673_v7 }
 0x109   : > { %1802 = vmatprep.mubr.msk.f32.mxu1 %vm695_vm2, %v674_v5 }
 0x10c   : > { %1803 = vmatmul.mubr.msk.f32.gmra.mxu1 %vm695_vm2, %v675_v12 }
 0x10d   : > { %1805 = vmatprep.mubr.msk.f32.mxu1 %vm695_vm2, %v676_v10 }
 0x110   : > { %1806 = vmatmul.mubr.msk.f32.gmra.mxu1 %vm695_vm2, %v677_v15 }
 0x111   : > { %1808 = vmatprep.mubr.msk.f32.mxu1 %vm695_vm2, %v678_v14 }
 0x114   : > { %1809 = vmatmul.mubr.msk.f32.gmra.mxu1 %vm695_vm2, %v679_v17 }
 0x198   : > { %v1765_v20 = vpop.f32.mrf.mxu1 }
 0x199   : > { %v864_v48 = vadd.f32 %v1765_v20, %v2147_v19 }
 0x19a   : > { %v858_v21 = vpop.f32.mrf.mxu1 }
 0x19b   : > { %v859_v22 = vadd.f32 %v2147_v19, %v858_v21  ;;  %v1018_v25 = vmax.f32 %v864_v48, 0.0 }
 0x19c   : > { %v1768_v23 = vpop.f32.mrf.mxu1 }
 0x19d   : > { %v1017_v24 = vmax.f32 %v859_v22, 0.0  ;;  %v874_v26 = vadd.f32 %v1768_v23, %v2147_v19 }
 0x19e   : > { %v868_v27 = vpop.f32.mrf.mxu1 }
 0x19f   : > { %v869_v28 = vadd.f32 %v2147_v19, %v868_v27  ;;  %1827 = vmatprep.mubr.msk.f32.mxu0 %vm695_vm2, %v1017_v24  ;;  %v1020_v31 = vmax.f32 %v874_v26, 0.0 }
 0x1a0   : > { %v1771_v29 = vpop.f32.mrf.mxu1  ;;  %1828 = vmatmul.mubr.msk.f32.vlgmr.msra.gmra.mxu0 %vm695_vm2, %v1018_v25 }
 0x1a1   : > { %v1019_v30 = vmax.f32 %v869_v28, 0.0  ;;  %v884_v32 = vadd.f32 %v1771_v29, %v2147_v19 }
 0x1a2   : > { %v878_v33 = vpop.f32.mrf.mxu1 }
 0x1a3   : > { %v879_v34 = vadd.f32 %v2147_v19, %v878_v33  ;;  %1830 = vmatprep.mubr.msk.f32.mxu0 %vm695_vm2, %v1019_v30  ;;  %v1022_v37 = vmax.f32 %v884_v32, 0.0 }
 0x1a4   : > { %v1774_v35 = vpop.f32.mrf.mxu1  ;;  %1831 = vmatmul.mubr.msk.f32.gmra.mxu0 %vm695_vm2, %v1020_v31 }
 0x1a5   : > { %v1021_v36 = vmax.f32 %v879_v34, 0.0  ;;  %v894_v38 = vadd.f32 %v1774_v35, %v2147_v19 }
 0x1a6   : > { %v888_v39 = vpop.f32.mrf.mxu1 }
 0x1a7   : > { %v889_v40 = vadd.f32 %v2147_v19, %v888_v39  ;;  %1833 = vmatprep.mubr.msk.f32.mxu0 %vm695_vm2, %v1021_v36  ;;  %v1024_v43 = vmax.f32 %v894_v38, 0.0 }
 0x1a8   : > { %v1777_v41 = vpop.f32.mrf.mxu1  ;;  %1834 = vmatmul.mubr.msk.f32.gmra.mxu0 %vm695_vm2, %v1022_v37 }
 0x1a9   : > { %v1023_v42 = vmax.f32 %v889_v40, 0.0  ;;  %v904_v44 = vadd.f32 %v1777_v41, %v2147_v19 }
 0x1aa   : > { %v898_v45 = vpop.f32.mrf.mxu1 }
 0x1ab   : > { %v899_v46 = vadd.f32 %v2147_v19, %v898_v45  ;;  %1836 = vmatprep.mubr.msk.f32.mxu0 %vm695_vm2, %v1023_v42  ;;  %v1026_v50 = vmax.f32 %v904_v44, 0.0 }
 0x1ac   : > { %v1780_v47 = vpop.f32.mrf.mxu1  ;;  %1837 = vmatmul.mubr.msk.f32.gmra.mxu0 %vm695_vm2, %v1024_v43 }
 0x1ad   : > { %v1025_v49 = vmax.f32 %v899_v46, 0.0  ;;  %v914_v51 = vadd.f32 %v1780_v47, %v2147_v19 }
 0x1ae   : > { %v908_v52 = vpop.f32.mrf.mxu1 }
 0x1af   : > { %v909_v53 = vadd.f32 %v2147_v19, %v908_v52  ;;  %1839 = vmatprep.mubr.msk.f32.mxu0 %vm695_vm2, %v1025_v49  ;;  %v1028_v56 = vmax.f32 %v914_v51, 0.0 }
 0x1b0   : > { %v1783_v54 = vpop.f32.mrf.mxu1  ;;  %1840 = vmatmul.mubr.msk.f32.gmra.mxu0 %vm695_vm2, %v1026_v50 }
 0x1b1   : > { %v1027_v55 = vmax.f32 %v909_v53, 0.0  ;;  %v924_v57 = vadd.f32 %v1783_v54, %v2147_v19  ;;  %v2216_v53 = vld [vmem:[%s2298_s6] ss:$0 sm:$0xff] }
 0x1b2   : > { %v918_v58 = vpop.f32.mrf.mxu1 }
 0x1b3   : > { %v919_v59 = vadd.f32 %v2147_v19, %v918_v58  ;;  %1842 = vmatprep.mubr.msk.f32.mxu0 %vm695_vm2, %v1027_v55  ;;  %v1030_v62 = vmax.f32 %v924_v57, 0.0 }
 0x1b4   : > { %v1786_v60 = vpop.f32.mrf.mxu1  ;;  %1843 = vmatmul.mubr.msk.f32.gmra.mxu0 %vm695_vm2, %v1028_v56 }
 0x1b5   : > { %v1029_v61 = vmax.f32 %v919_v59, 0.0  ;;  %v934_v63 = vadd.f32 %v1786_v60, %v2147_v19 }
 0x1b6   : > { %v928_v0 = vpop.f32.mrf.mxu1 }
 0x1b7   : > { %v929_v1 = vadd.f32 %v2147_v19, %v928_v0  ;;  %1845 = vmatprep.mubr.msk.f32.mxu0 %vm695_vm2, %v1029_v61  ;;  %v1032_v4 = vmax.f32 %v934_v63, 0.0 }
 0x1b8   : > { %v1789_v2 = vpop.f32.mrf.mxu1  ;;  %1846 = vmatmul.mubr.msk.f32.gmra.mxu0 %vm695_vm2, %v1030_v62 }
 0x1b9   : > { %v1031_v3 = vmax.f32 %v929_v1, 0.0  ;;  %v944_v5 = vadd.f32 %v1789_v2, %v2147_v19 }
 0x1ba   : > { %v938_v6 = vpop.f32.mrf.mxu1 }
 0x1bb   : > { %v939_v7 = vadd.f32 %v2147_v19, %v938_v6  ;;  %1848 = vmatprep.mubr.msk.f32.mxu0 %vm695_vm2, %v1031_v3  ;;  %v1034_v10 = vmax.f32 %v944_v5, 0.0 }
 0x1bc   : > { %v1792_v8 = vpop.f32.mrf.mxu1  ;;  %1849 = vmatmul.mubr.msk.f32.gmra.mxu0 %vm695_vm2, %v1032_v4 }
 0x1bd   : > { %v1033_v9 = vmax.f32 %v939_v7, 0.0  ;;  %v954_v11 = vadd.f32 %v1792_v8, %v2147_v19 }
 0x1be   : > { %v948_v12 = vpop.f32.mrf.mxu1 }
 0x1bf   : > { %v949_v13 = vadd.f32 %v2147_v19, %v948_v12  ;;  %1851 = vmatprep.mubr.msk.f32.mxu0 %vm695_vm2, %v1033_v9  ;;  %v1036_v16 = vmax.f32 %v954_v11, 0.0 }
 0x1c0   : > { %v1795_v14 = vpop.f32.mrf.mxu1  ;;  %1852 = vmatmul.mubr.msk.f32.gmra.mxu0 %vm695_vm2, %v1034_v10 }
 0x1c1   : > { %v1035_v15 = vmax.f32 %v949_v13, 0.0  ;;  %v964_v17 = vadd.f32 %v1795_v14, %v2147_v19 }
 0x1c2   : > { %v958_v18 = vpop.f32.mrf.mxu1 }
 0x1c3   : > { %v959_v20 = vadd.f32 %v2147_v19, %v958_v18  ;;  %1854 = vmatprep.mubr.msk.f32.mxu0 %vm695_vm2, %v1035_v15  ;;  %v1038_v22 = vmax.f32 %v964_v17, 0.0 }
 0x1c4   : > { %v1798_v48 = vpop.f32.mrf.mxu1  ;;  %1855 = vmatmul.mubr.msk.f32.gmra.mxu0 %vm695_vm2, %v1036_v16 }
 0x1c5   : > { %v1037_v21 = vmax.f32 %v959_v20, 0.0  ;;  %v974_v23 = vadd.f32 %v1798_v48, %v2147_v19 }
 0x1c6   : > { %v968_v24 = vpop.f32.mrf.mxu1 }
 0x1c7   : > { %v969_v25 = vadd.f32 %v2147_v19, %v968_v24  ;;  %1857 = vmatprep.mubr.msk.f32.mxu0 %vm695_vm2, %v1037_v21  ;;  %v1040_v28 = vmax.f32 %v974_v23, 0.0 }
 0x1c8   : > { %v1801_v26 = vpop.f32.mrf.mxu1  ;;  %1858 = vmatmul.mubr.msk.f32.gmra.mxu0 %vm695_vm2, %v1038_v22 }
 0x1c9   : > { %v1039_v27 = vmax.f32 %v969_v25, 0.0  ;;  %v984_v29 = vadd.f32 %v1801_v26, %v2147_v19 }
 0x1ca   : > { %v978_v30 = vpop.f32.mrf.mxu1 }
 0x1cb   : > { %v979_v31 = vadd.f32 %v2147_v19, %v978_v30  ;;  %1860 = vmatprep.mubr.msk.f32.mxu0 %vm695_vm2, %v1039_v27  ;;  %v1042_v34 = vmax.f32 %v984_v29, 0.0 }
 0x1cc   : > { %v1804_v32 = vpop.f32.mrf.mxu1  ;;  %1861 = vmatmul.mubr.msk.f32.gmra.mxu0 %vm695_vm2, %v1040_v28 }
 0x1cd   : > { %v1041_v33 = vmax.f32 %v979_v31, 0.0  ;;  %v994_v35 = vadd.f32 %v1804_v32, %v2147_v19 }
 0x1ce   : > { %v988_v36 = vpop.f32.mrf.mxu1 }
 0x1cf   : > { %v989_v37 = vadd.f32 %v2147_v19, %v988_v36  ;;  %1863 = vmatprep.mubr.msk.f32.mxu0 %vm695_vm2, %v1041_v33  ;;  %v1044_v40 = vmax.f32 %v994_v35, 0.0 }
 0x1d0   : > { %v1807_v38 = vpop.f32.mrf.mxu1  ;;  %1864 = vmatmul.mubr.msk.f32.gmra.mxu0 %vm695_vm2, %v1042_v34 }
 0x1d1   : > { %v1043_v39 = vmax.f32 %v989_v37, 0.0  ;;  %v1004_v41 = vadd.f32 %v1807_v38, %v2147_v19 }
 0x1d2   : > { %v998_v42 = vpop.f32.mrf.mxu1 }
 0x1d3   : > { %v999_v43 = vadd.f32 %v2147_v19, %v998_v42  ;;  %1866 = vmatprep.mubr.msk.f32.mxu0 %vm695_vm2, %v1043_v39  ;;  %v1046_v46 = vmax.f32 %v1004_v41, 0.0 }
 0x1d4   : > { %v1810_v44 = vpop.f32.mrf.mxu1  ;;  %1867 = vmatmul.mubr.msk.f32.gmra.mxu0 %vm695_vm2, %v1044_v40 }
 0x1d5   : > { %v1045_v45 = vmax.f32 %v999_v43, 0.0  ;;  %v1014_v47 = vadd.f32 %v1810_v44, %v2147_v19 }
 0x1d6   : > { %v1008_v49 = vpop.f32.mrf.mxu1 }
 0x1d7   : > { %v1009_v50 = vadd.f32 %v2147_v19, %v1008_v49  ;;  %1869 = vmatprep.mubr.msk.f32.mxu0 %vm695_vm2, %v1045_v45  ;;  %v1048_v52 = vmax.f32 %v1014_v47, 0.0 }
 0x1d8   : > { %1870 = vmatmul.mubr.msk.f32.gmra.mxu0 %vm695_vm2, %v1046_v46 }
 0x1d9   : > { %v1047_v51 = vmax.f32 %v1009_v50, 0.0 }
 0x1db   : > { %1872 = vmatprep.mubr.msk.f32.mxu0 %vm695_vm2, %v1047_v51 }
 0x1dc   : > { %1873 = vmatmul.mubr.msk.f32.gmra.mxu0 %vm695_vm2, %v1048_v52 }
 0x260   : > { %v1829_v19 = vpop.f32.mrf.mxu0 }
 0x261   : > { %v1232_v54 = vadd.f32 %v1829_v19, %v2216_v53 }
 0x262   : > { %v1226_v55 = vpop.f32.mrf.mxu0 }
 0x263   : > { %1386 = vst [vmem:[%s2223_s10 + $0x8] sm:$0xff] %v1232_v54  ;;  %v1227_v56 = vadd.f32 %v2216_v53, %v1226_v55 }
 0x264   : > { %v1832_v57 = vpop.f32.mrf.mxu0 }
 0x265   : > { %1385 = vst [vmem:[%s2223_s10] sm:$0xff] %v1227_v56  ;;  %v1242_v58 = vadd.f32 %v1832_v57, %v2216_v53 }
 0x266   : > { %v1236_v59 = vpop.f32.mrf.mxu0 }
 0x267   : > { %1388 = vst [vmem:[%s2223_s10 + $0x18] sm:$0xff] %v1242_v58  ;;  %v1237_v60 = vadd.f32 %v2216_v53, %v1236_v59 }
 0x268   : > { %v1835_v61 = vpop.f32.mrf.mxu0 }
 0x269   : > { %1387 = vst [vmem:[%s2223_s10 + $0x10] sm:$0xff] %v1237_v60  ;;  %v1252_v62 = vadd.f32 %v1835_v61, %v2216_v53 }
 0x26a   : > { %v1246_v63 = vpop.f32.mrf.mxu0 }
 0x26b   : > { %1390 = vst [vmem:[%s2223_s10 + $0x28] sm:$0xff] %v1252_v62  ;;  %v1247_v0 = vadd.f32 %v2216_v53, %v1246_v63 }
 0x26c   : > { %v1838_v1 = vpop.f32.mrf.mxu0 }
 0x26d   : > { %1389 = vst [vmem:[%s2223_s10 + $0x20] sm:$0xff] %v1247_v0  ;;  %v1262_v2 = vadd.f32 %v1838_v1, %v2216_v53 }
 0x26e   : > { %v1256_v3 = vpop.f32.mrf.mxu0 }
 0x26f   : > { %1392 = vst [vmem:[%s2223_s10 + $0x38] sm:$0xff] %v1262_v2  ;;  %v1257_v4 = vadd.f32 %v2216_v53, %v1256_v3 }
 0x270   : > { %v1841_v5 = vpop.f32.mrf.mxu0 }
 0x271   : > { %1391 = vst [vmem:[%s2223_s10 + $0x30] sm:$0xff] %v1257_v4  ;;  %v1272_v6 = vadd.f32 %v1841_v5, %v2216_v53 }
 0x272   : > { %v1266_v7 = vpop.f32.mrf.mxu0 }
 0x273   : > { %1394 = vst [vmem:[%s2223_s10 + $0x48] sm:$0xff] %v1272_v6  ;;  %v1267_v8 = vadd.f32 %v2216_v53, %v1266_v7 }
 0x274   : > { %v1844_v9 = vpop.f32.mrf.mxu0 }
 0x275   : > { %1393 = vst [vmem:[%s2223_s10 + $0x40] sm:$0xff] %v1267_v8  ;;  %v1282_v10 = vadd.f32 %v1844_v9, %v2216_v53 }
 0x276   : > { %v1276_v11 = vpop.f32.mrf.mxu0 }
 0x277   : > { %1396 = vst [vmem:[%s2223_s10 + $0x58] sm:$0xff] %v1282_v10  ;;  %v1277_v12 = vadd.f32 %v2216_v53, %v1276_v11 }
 0x278   : > { %v1847_v13 = vpop.f32.mrf.mxu0 }
 0x279   : > { %1395 = vst [vmem:[%s2223_s10 + $0x50] sm:$0xff] %v1277_v12  ;;  %v1292_v14 = vadd.f32 %v1847_v13, %v2216_v53 }
 0x27a   : > { %v1286_v15 = vpop.f32.mrf.mxu0 }
 0x27b   : > { %1398 = vst [vmem:[%s2223_s10 + $0x68] sm:$0xff] %v1292_v14  ;;  %v1287_v16 = vadd.f32 %v2216_v53, %v1286_v15 }
 0x27c   : > { %v1850_v17 = vpop.f32.mrf.mxu0 }
 0x27d   : > { %1397 = vst [vmem:[%s2223_s10 + $0x60] sm:$0xff] %v1287_v16  ;;  %v1302_v18 = vadd.f32 %v1850_v17, %v2216_v53 }
 0x27e   : > { %v1296_v20 = vpop.f32.mrf.mxu0 }
 0x27f   : > { %1400 = vst [vmem:[%s2223_s10 + $0x78] sm:$0xff] %v1302_v18  ;;  %v1297_v48 = vadd.f32 %v2216_v53, %v1296_v20 }
 0x280   : > { %v1853_v21 = vpop.f32.mrf.mxu0 }
 0x281   : > { %1399 = vst [vmem:[%s2223_s10 + $0x70] sm:$0xff] %v1297_v48  ;;  %v1312_v22 = vadd.f32 %v1853_v21, %v2216_v53 }
 0x282   : > { %v1306_v23 = vpop.f32.mrf.mxu0 }
 0x283   : > { %1402 = vst [vmem:[%s2223_s10 + $0x88] sm:$0xff] %v1312_v22  ;;  %v1307_v24 = vadd.f32 %v2216_v53, %v1306_v23 }
 0x284   : > { %v1856_v25 = vpop.f32.mrf.mxu0 }
 0x285   : > { %1401 = vst [vmem:[%s2223_s10 + $0x80] sm:$0xff] %v1307_v24  ;;  %v1322_v26 = vadd.f32 %v1856_v25, %v2216_v53 }
 0x286   : > { %v1316_v27 = vpop.f32.mrf.mxu0 }
 0x287   : > { %1404 = vst [vmem:[%s2223_s10 + $0x98] sm:$0xff] %v1322_v26  ;;  %v1317_v28 = vadd.f32 %v2216_v53, %v1316_v27 }
 0x288   : > { %v1859_v29 = vpop.f32.mrf.mxu0 }
 0x289   : > { %1403 = vst [vmem:[%s2223_s10 + $0x90] sm:$0xff] %v1317_v28  ;;  %v1332_v30 = vadd.f32 %v1859_v29, %v2216_v53 }
 0x28a   : > { %v1326_v31 = vpop.f32.mrf.mxu0 }
 0x28b   : > { %1406 = vst [vmem:[%s2223_s10 + $0xa8] sm:$0xff] %v1332_v30  ;;  %v1327_v32 = vadd.f32 %v2216_v53, %v1326_v31 }
 0x28c   : > { %v1862_v33 = vpop.f32.mrf.mxu0 }
 0x28d   : > { %1405 = vst [vmem:[%s2223_s10 + $0xa0] sm:$0xff] %v1327_v32  ;;  %v1342_v34 = vadd.f32 %v1862_v33, %v2216_v53 }
 0x28e   : > { %v1336_v35 = vpop.f32.mrf.mxu0 }
 0x28f   : > { %1408 = vst [vmem:[%s2223_s10 + $0xb8] sm:$0xff] %v1342_v34  ;;  %v1337_v36 = vadd.f32 %v2216_v53, %v1336_v35 }
 0x290   : > { %v1865_v37 = vpop.f32.mrf.mxu0 }
 0x291   : > { %1407 = vst [vmem:[%s2223_s10 + $0xb0] sm:$0xff] %v1337_v36  ;;  %v1352_v38 = vadd.f32 %v1865_v37, %v2216_v53 }
 0x292   : > { %v1346_v39 = vpop.f32.mrf.mxu0 }
 0x293   : > { %1410 = vst [vmem:[%s2223_s10 + $0xc8] sm:$0xff] %v1352_v38  ;;  %v1347_v40 = vadd.f32 %v2216_v53, %v1346_v39 }
 0x294   : > { %v1868_v41 = vpop.f32.mrf.mxu0 }
 0x295   : > { %1409 = vst [vmem:[%s2223_s10 + $0xc0] sm:$0xff] %v1347_v40  ;;  %v1362_v42 = vadd.f32 %v1868_v41, %v2216_v53 }
 0x296   : > { %v1356_v43 = vpop.f32.mrf.mxu0 }
 0x297   : > { %1412 = vst [vmem:[%s2223_s10 + $0xd8] sm:$0xff] %v1362_v42  ;;  %v1357_v44 = vadd.f32 %v2216_v53, %v1356_v43 }
 0x298   : > { %v1871_v45 = vpop.f32.mrf.mxu0 }
 0x299   : > { %1411 = vst [vmem:[%s2223_s10 + $0xd0] sm:$0xff] %v1357_v44  ;;  %v1372_v46 = vadd.f32 %v1871_v45, %v2216_v53 }
 0x29a   : > { %v1366_v47 = vpop.f32.mrf.mxu0 }
 0x29b   : > { %1414 = vst [vmem:[%s2223_s10 + $0xe8] sm:$0xff] %v1372_v46  ;;  %v1367_v49 = vadd.f32 %v2216_v53, %v1366_v47 }
 0x29c   : > { %v1874_v50 = vpop.f32.mrf.mxu0 }
 0x29d   : > { %1413 = vst [vmem:[%s2223_s10 + $0xe0] sm:$0xff] %v1367_v49  ;;  %v1382_v51 = vadd.f32 %v1874_v50, %v2216_v53 }
 0x29e   : > { %v1376_v52 = vpop.f32.mrf.mxu0 }
 0x29f   : > { %1416 = vst [vmem:[%s2223_s10 + $0xf8] sm:$0xff] %v1382_v51  ;;  %v1377_v19 = vadd.f32 %v2216_v53, %v1376_v52 }
 0x2a1   : > { %1415 = vst [vmem:[%s2223_s10 + $0xf0] sm:$0xff] %v1377_v19 }
 0x2a2 PF: > { %s17_s24 = sadd.s32 1, %s1891_s24  }
 0x2a3   : > { %p14_p4 = scmp.ge.s32.totalorder %s17_s24, 4  }
 0x2a5   :  { %16 = sbr.rel (!%p14_p4) target bundleno = 1 (0x1), region = 78 }

</bundles_post_ra>
